<compile_context>
chip_gen: v7x
topology: tpu7x:2x2x1
jax: 0.10.0
libtpu: 0.0.40
codegen_flags: <defaults>
</compile_context>

<pallas_src>
import math
from functools import partial

import jax
import jax.numpy as jnp
from jax.experimental import pallas as pl
from jax.experimental.pallas import tpu as pltpu

jax.config.update("jax_default_matmul_precision", "highest")

EPS = 1e-5
_PREC = jax.lax.Precision.HIGHEST


def _round_up(n, m):
    return ((n + m - 1) // m) * m


def _w_offsets(ck, n1):
    # Row offsets of the packed weight blocks (each starts on an 8-row boundary).
    off2 = _round_up(3 * ck, 8)           # fused conv2-tap weight
    off3 = _round_up(off2 + 3 * n1, 8)    # conv3 weight
    return off2, off3


# --------------------------------- kernel ---------------------------------
def _bn_stats(x):
    # Two-pass biased BatchNorm stats over rows (batch*length), per channel.
    inv_n = 1.0 / x.shape[0]
    m = jnp.sum(x, axis=0, keepdims=True) * inv_n
    d = x - m
    var = jnp.sum(d * d, axis=0, keepdims=True) * inv_n
    return m, jax.lax.rsqrt(var + EPS)


def urblock_kernel(x_ref, w_ref, p_ref, out_ref, *, L, ck, c2, n1, off2, off3):
    x = x_ref[...]                                           # (BL, Ck)
    BL = x.shape[0]

    # ---- shared single stats pass for bnorm1 / bnorms (same input tensor) ---
    m, rstd = _bn_stats(x)
    xn = (x - m) * rstd
    a1 = jnp.maximum(xn * p_ref[0:1, 0:ck] + p_ref[1:2, 0:ck], 0.0)   # relu(bn1 x)
    a_s = jnp.maximum(xn * p_ref[2:3, 0:ck] + p_ref[3:4, 0:ck], 0.0)  # relu(bns x)

    # ---- stage 1: ONE matmul -> cols [0:cin]=r+shortcut, [cin:n1]=conv1 out --
    lhs1 = jnp.concatenate([x, a1, a_s], axis=-1)            # (BL, 3*Ck)
    y1 = jnp.dot(lhs1, w_ref[0:3 * ck, 0:n1],
                 preferred_element_type=jnp.float32, precision=_PREC)
    y1 = y1 + p_ref[4:5, 0:n1]

    # ---- bn2 + relu on the fused slab: per-channel stats => conv1 cols exact;
    #      the r+shortcut cols only ever hit zero rows of the conv2 weight -----
    m2, rstd2 = _bn_stats(y1)
    a2 = jnp.maximum((y1 - m2) * rstd2 * p_ref[5:6, 0:n1] + p_ref[6:7, 0:n1], 0.0)

    # ---- conv2 (k=3, 'same'): ONE matmul over [prev | center | next] taps ----
    row = jax.lax.broadcasted_iota(jnp.int32, (BL, 1), 0)
    zr = jnp.zeros((1, n1), jnp.float32)
    prev = jnp.concatenate([zr, a2[:-1, :]], axis=0)          # x[l-1]
    prev = jnp.where(row % L == 0, 0.0, prev)                 # zero at seq start
    nxt = jnp.concatenate([a2[1:, :], zr], axis=0)            # x[l+1]
    nxt = jnp.where(row % L == L - 1, 0.0, nxt)               # zero at seq end
    taps = jnp.concatenate([prev, a2, nxt], axis=-1)          # (BL, 3*n1)
    h2 = jnp.dot(taps, w_ref[off2:off2 + 3 * n1, 0:c2],
                 preferred_element_type=jnp.float32, precision=_PREC)
    h2 = h2 + p_ref[7:8, 0:c2]

    # ---- bn3 + relu + conv3 (1x1); result lands in cols [0:cin] of the n1-wide
    #      slab so the residual add needs no lane slicing in-kernel -------------
    m3, rstd3 = _bn_stats(h2)
    a3 = jnp.maximum((h2 - m3) * rstd3 * p_ref[8:9, 0:c2] + p_ref[9:10, 0:c2], 0.0)
    h3 = jnp.dot(a3, w_ref[off3:off3 + c2, 0:n1],
                 preferred_element_type=jnp.float32, precision=_PREC)
    h3 = h3 + p_ref[10:11, 0:n1]

    # cols [0:cin] = conv3 + shortcut + r ; cols [cin:n1] are dropped outside.
    out_ref[...] = h3 + y1


# ----------------------------- param packing -------------------------------
def pack_params(p):
    """Run-once preprocessing: pack all weights/BN params into two VMEM slabs."""
    cin, k = p["in_chans"], p["k"]
    ck, c2 = cin * k, cin // 2
    n1 = cin + c2                                  # fused stage-1 width: [r+sc | h1]
    f32 = jnp.float32

    # channel-group-sum selection matrix: S[c*k + j, c] = 1
    smat = jnp.zeros((ck, cin), f32).at[jnp.arange(ck), jnp.arange(ck) // k].set(1.0)
    w1t = jnp.transpose(p["W1"][:, :, 0])          # (ck, c2)
    wst = jnp.transpose(p["Ws"][:, :, 0])          # (ck, cin)
    w3t = jnp.transpose(p["W3"][:, :, 0])          # (c2, cin)

    # fused stage-1 weight: rows consume [x | relu(bn1 x) | relu(bns x)]
    wf1 = jnp.zeros((3 * ck, n1), f32)
    wf1 = wf1.at[0:ck, 0:cin].set(smat)            # r (group sum of raw x)
    wf1 = wf1.at[ck:2 * ck, cin:n1].set(w1t)       # conv1
    wf1 = wf1.at[2 * ck:3 * ck, 0:cin].set(wst)    # shortcut (no bias)

    # fused conv2-tap weight: rows consume [prev | center | next] (n1-wide each);
    # only the conv1-output columns carry nonzero weights.
    w2f = jnp.zeros((3 * n1, c2), f32)
    for j in range(3):
        w2f = w2f.at[j * n1 + cin:(j + 1) * n1, :].set(jnp.transpose(p["W2"][:, :, j]))

    off2, off3 = _w_offsets(ck, n1)
    rows = _round_up(off3 + c2, 8)
    wcols = max(n1, cin, c2)
    w_slab = jnp.zeros((rows, wcols), f32)
    w_slab = w_slab.at[0:3 * ck, 0:n1].set(wf1)
    w_slab = w_slab.at[off2:off2 + 3 * n1, 0:c2].set(w2f)
    w_slab = w_slab.at[off3:off3 + c2, 0:cin].set(w3t)

    # BN / bias slab, one param per row (lane offset 0 everywhere)
    rows_vals = [
        p["g1"], p["be1"], p["gs"], p["bes"],
        jnp.concatenate([jnp.zeros((cin,), f32), p["b1"]]),    # fused stage-1 bias
        jnp.concatenate([jnp.ones((cin,), f32), p["g2"]]),     # padded gamma2
        jnp.concatenate([jnp.zeros((cin,), f32), p["be2"]]),   # padded beta2
        p["b2"], p["g3"], p["be3"], p["b3"],
    ]
    p_slab = jnp.zeros((_round_up(len(rows_vals), 8), max(ck, n1)), f32)
    for r, v in enumerate(rows_vals):
        p_slab = p_slab.at[r, 0:v.shape[0]].set(v.astype(f32))
    return w_slab, p_slab


# -------------------------------- wrapper -----------------------------------
@partial(jax.jit, static_argnames=("cin",))
def urblock_forward(bs, ts, w_slab, p_slab, *, cin):
    """bs, ts: (B, C, L) channels-first (PyTorch NCL). Returns (B, cin, L)."""
    Bs = jnp.concatenate([bs, ts], axis=1)                    # (B, Ck, L)
    B, ck, L = Bs.shape
    x = jnp.transpose(Bs, (0, 2, 1)).reshape(B * L, ck).astype(jnp.float32)
    c2 = cin // 2
    n1 = cin + c2
    off2, off3 = _w_offsets(ck, n1)

    kernel = partial(urblock_kernel, L=L, ck=ck, c2=c2,
                     n1=n1, off2=off2, off3=off3)
    flops = 2 * B * L * (3 * ck * n1 + 3 * n1 * c2 + c2 * n1)
    bytes_accessed = 4 * (x.size + w_slab.size + p_slab.size + B * L * n1)

    out2d = pl.pallas_call(
        kernel,
        out_shape=jax.ShapeDtypeStruct((B * L, n1), jnp.float32),
        in_specs=[pl.BlockSpec(memory_space=pltpu.MemorySpace.VMEM)] * 3,
        out_specs=pl.BlockSpec(memory_space=pltpu.MemorySpace.VMEM),
        cost_estimate=pl.CostEstimate(flops=flops, transcendentals=ck + n1 + c2,
                                      bytes_accessed=bytes_accessed),
        compiler_params=pltpu.CompilerParams(vmem_limit_bytes=32 * 1024 * 1024),
    )(x, w_slab, p_slab)

    # TODO(synk): for production-sized L, switch to an L-tiled grid ("parallel"
    # semantics for v7x dual-TC) with a separate BN-stats pass and an
    # L-on-lanes layout so the output store is lane-dense.
    out = out2d.reshape(B, L, n1)[:, :, :cin]                 # drop helper cols
    return jnp.transpose(out, (0, 2, 1))                      # (B, cin, L)


# --------------------------- pure-JAX reference -----------------------------
def urblock_reference(bs, ts, p):
    Bs = jnp.concatenate([bs, ts], axis=1)                    # (B, Ck, L)
    B, Ck, L = Bs.shape
    k = p["k"]
    cin = Ck // k
    r = Bs.reshape(B, cin, k, L).sum(2)

    def bn(x, g, b):
        m = x.mean(axis=(0, 2), keepdims=True)
        v = jnp.square(x - m).mean(axis=(0, 2), keepdims=True)
        return (x - m) / jnp.sqrt(v + EPS) * g[None, :, None] + b[None, :, None]

    def conv1d(x, w, b=None):
        y = jax.lax.conv_general_dilated(x, w, (1,), "SAME",
                                         dimension_numbers=("NCH", "OIH", "NCH"),
                                         precision=_PREC)
        if b is not None:
            y = y + b[None, :, None]
        return y

    relu = lambda z: jnp.maximum(z, 0.0)
    h = conv1d(relu(bn(Bs, p["g1"], p["be1"])), p["W1"], p["b1"])
    h = conv1d(relu(bn(h, p["g2"], p["be2"])), p["W2"], p["b2"])
    h = conv1d(relu(bn(h, p["g3"], p["be3"])), p["W3"], p["b3"])
    sc = conv1d(relu(bn(Bs, p["gs"], p["bes"])), p["Ws"])
    return (h + sc) + r


# ------------------------------ param init ----------------------------------
def make_params(key, in_chans, k):
    ck, c2 = in_chans * k, in_chans // 2

    def xavier(key, shape):                          # shape = (Cout, Cin, K)
        cout, cin, ksz = shape
        bound = math.sqrt(6.0 / (cin * ksz + cout * ksz))
        return jax.random.uniform(key, shape, jnp.float32, -bound, bound)

    k1, k2, k3, k4 = jax.random.split(key, 4)
    return {
        "in_chans": in_chans, "k": k,
        "W1": xavier(k1, (c2, ck, 1)),       "b1": jnp.zeros((c2,), jnp.float32),
        "W2": xavier(k2, (c2, c2, 3)),       "b2": jnp.zeros((c2,), jnp.float32),
        "W3": xavier(k3, (in_chans, c2, 1)), "b3": jnp.zeros((in_chans,), jnp.float32),
        "Ws": xavier(k4, (in_chans, ck, 1)),                 # shortcut (no bias)
        # BatchNorm affine params (PyTorch default init: gamma=1, beta=0)
        "g1": jnp.ones((ck,), jnp.float32), "be1": jnp.zeros((ck,), jnp.float32),
        "g2": jnp.ones((c2,), jnp.float32), "be2": jnp.zeros((c2,), jnp.float32),
        "g3": jnp.ones((c2,), jnp.float32), "be3": jnp.zeros((c2,), jnp.float32),
        "gs": jnp.ones((ck,), jnp.float32), "bes": jnp.zeros((ck,), jnp.float32),
    }


# ---------------------------------- main ------------------------------------
if __name__ == "__main__":
    B, in_chans, k, L = 2, 8, 2, 16            # bs/ts: (B, in_chans*(k-1), L) each

    root = jax.random.PRNGKey(0)
    kp, kb, kt = jax.random.split(root, 3)
    params = make_params(kp, in_chans, k)
    w_slab, p_slab = pack_params(params)       # run-once, kernel-ready layouts
    bs = jax.random.normal(kb, (B, in_chans, L), jnp.float32)
    ts = jax.random.normal(kt, (B, in_chans * (k - 1), L), jnp.float32)

    out = jax.block_until_ready(urblock_forward(bs, ts, w_slab, p_slab, cin=in_chans))
    ref = jax.block_until_ready(urblock_reference(bs, ts, params))

    assert out.shape == (B, in_chans, L), out.shape
    err = float(jnp.abs(out - ref).max())
    assert jnp.allclose(out, ref, rtol=1e-3, atol=1e-3), err
    print("KERNEL_OK")
</pallas_src>

<mosaic_0001>
module attributes {stable_mosaic.version = 11 : i64} {
  func.func @urblock_kernel(%arg0: memref<32x16xf32, #tpu.memory_space<vmem>>, %arg1: memref<96x12xf32, #tpu.memory_space<vmem>>, %arg2: memref<16x16xf32, #tpu.memory_space<vmem>>, %arg3: memref<32x12xf32, #tpu.memory_space<vmem>>) attributes {dimension_semantics = [], scalar_prefetch = 0 : i64, scratch_operands = 0 : i64, tpu.core_type = #tpu.core_type<tc>} {
    %c0 = arith.constant 0 : index
    %c0_0 = arith.constant 0 : index
    %0 = vector.load %arg0[%c0, %c0_0] : memref<32x16xf32, #tpu.memory_space<vmem>>, vector<32x16xf32>
    %cst = arith.constant dense<0.000000e+00> : vector<16xf32>
    %1 = vector.multi_reduction <add>, %0, %cst [0] : vector<32x16xf32> to vector<16xf32>
    %2 = vector.shape_cast %1 : vector<16xf32> to vector<1x16xf32>
    %cst_1 = arith.constant 3.125000e-02 : f32
    %3 = vector.broadcast %cst_1 : f32 to vector<1x16xf32>
    %4 = arith.mulf %2, %3 : vector<1x16xf32>
    %5 = vector.broadcast %4 : vector<1x16xf32> to vector<32x16xf32>
    %6 = arith.subf %0, %5 : vector<32x16xf32>
    %7 = arith.mulf %6, %6 : vector<32x16xf32>
    %cst_2 = arith.constant dense<0.000000e+00> : vector<16xf32>
    %8 = vector.multi_reduction <add>, %7, %cst_2 [0] : vector<32x16xf32> to vector<16xf32>
    %9 = vector.shape_cast %8 : vector<16xf32> to vector<1x16xf32>
    %cst_3 = arith.constant 3.125000e-02 : f32
    %10 = vector.broadcast %cst_3 : f32 to vector<1x16xf32>
    %11 = arith.mulf %9, %10 : vector<1x16xf32>
    %cst_4 = arith.constant 9.99999974E-6 : f32
    %12 = vector.broadcast %cst_4 : f32 to vector<1x16xf32>
    %13 = arith.addf %11, %12 : vector<1x16xf32>
    %14 = math.rsqrt %13 : vector<1x16xf32>
    %15 = vector.broadcast %4 : vector<1x16xf32> to vector<32x16xf32>
    %16 = arith.subf %0, %15 : vector<32x16xf32>
    %17 = vector.broadcast %14 : vector<1x16xf32> to vector<32x16xf32>
    %18 = arith.mulf %16, %17 : vector<32x16xf32>
    %c0_5 = arith.constant 0 : index
    %c0_6 = arith.constant 0 : index
    %19 = vector.load %arg2[%c0_5, %c0_6] : memref<16x16xf32, #tpu.memory_space<vmem>>, vector<1x16xf32>
    %20 = vector.broadcast %19 : vector<1x16xf32> to vector<32x16xf32>
    %21 = arith.mulf %18, %20 : vector<32x16xf32>
    %c1 = arith.constant 1 : index
    %c0_7 = arith.constant 0 : index
    %22 = vector.load %arg2[%c1, %c0_7] : memref<16x16xf32, #tpu.memory_space<vmem>>, vector<1x16xf32>
    %23 = vector.broadcast %22 : vector<1x16xf32> to vector<32x16xf32>
    %24 = arith.addf %21, %23 : vector<32x16xf32>
    %cst_8 = arith.constant 0.000000e+00 : f32
    %25 = vector.broadcast %cst_8 : f32 to vector<32x16xf32>
    %26 = arith.maximumf %24, %25 : vector<32x16xf32>
    %c2 = arith.constant 2 : index
    %c0_9 = arith.constant 0 : index
    %27 = vector.load %arg2[%c2, %c0_9] : memref<16x16xf32, #tpu.memory_space<vmem>>, vector<1x16xf32>
    %28 = vector.broadcast %27 : vector<1x16xf32> to vector<32x16xf32>
    %29 = arith.mulf %18, %28 : vector<32x16xf32>
    %c3 = arith.constant 3 : index
    %c0_10 = arith.constant 0 : index
    %30 = vector.load %arg2[%c3, %c0_10] : memref<16x16xf32, #tpu.memory_space<vmem>>, vector<1x16xf32>
    %31 = vector.broadcast %30 : vector<1x16xf32> to vector<32x16xf32>
    %32 = arith.addf %29, %31 : vector<32x16xf32>
    %cst_11 = arith.constant 0.000000e+00 : f32
    %33 = vector.broadcast %cst_11 : f32 to vector<32x16xf32>
    %34 = arith.maximumf %32, %33 : vector<32x16xf32>
    %35 = tpu.concatenate %0, %26, %34 in 1 : vector<32x16xf32>, vector<32x16xf32>, vector<32x16xf32> -> vector<32x48xf32>
    %c0_12 = arith.constant 0 : index
    %c0_13 = arith.constant 0 : index
    %36 = vector.load %arg1[%c0_12, %c0_13] : memref<96x12xf32, #tpu.memory_space<vmem>>, vector<48x12xf32>
    %cst_14 = arith.constant dense<0.000000e+00> : vector<32x12xf32>
    %37 = tpu.matmul %35, %36, %cst_14 {dimension_numbers = #tpu.dot_dimension_numbers<[1], [0], [0], [1], [0, 0, 1, 1], [], []>, precision = #tpu.contract_precision<fp32>} : vector<32x48xf32>, vector<48x12xf32>, vector<32x12xf32> -> vector<32x12xf32>
    %c4 = arith.constant 4 : index
    %c0_15 = arith.constant 0 : index
    %38 = vector.load %arg2[%c4, %c0_15] : memref<16x16xf32, #tpu.memory_space<vmem>>, vector<1x12xf32>
    %39 = vector.broadcast %38 : vector<1x12xf32> to vector<32x12xf32>
    %40 = arith.addf %37, %39 : vector<32x12xf32>
    %cst_16 = arith.constant dense<0.000000e+00> : vector<12xf32>
    %41 = vector.multi_reduction <add>, %40, %cst_16 [0] : vector<32x12xf32> to vector<12xf32>
    %42 = vector.shape_cast %41 : vector<12xf32> to vector<1x12xf32>
    %cst_17 = arith.constant 3.125000e-02 : f32
    %43 = vector.broadcast %cst_17 : f32 to vector<1x12xf32>
    %44 = arith.mulf %42, %43 : vector<1x12xf32>
    %45 = vector.broadcast %44 : vector<1x12xf32> to vector<32x12xf32>
    %46 = arith.subf %40, %45 : vector<32x12xf32>
    %47 = arith.mulf %46, %46 : vector<32x12xf32>
    %cst_18 = arith.constant dense<0.000000e+00> : vector<12xf32>
    %48 = vector.multi_reduction <add>, %47, %cst_18 [0] : vector<32x12xf32> to vector<12xf32>
    %49 = vector.shape_cast %48 : vector<12xf32> to vector<1x12xf32>
    %cst_19 = arith.constant 3.125000e-02 : f32
    %50 = vector.broadcast %cst_19 : f32 to vector<1x12xf32>
    %51 = arith.mulf %49, %50 : vector<1x12xf32>
    %cst_20 = arith.constant 9.99999974E-6 : f32
    %52 = vector.broadcast %cst_20 : f32 to vector<1x12xf32>
    %53 = arith.addf %51, %52 : vector<1x12xf32>
    %54 = math.rsqrt %53 : vector<1x12xf32>
    %55 = vector.broadcast %44 : vector<1x12xf32> to vector<32x12xf32>
    %56 = arith.subf %40, %55 : vector<32x12xf32>
    %57 = vector.broadcast %54 : vector<1x12xf32> to vector<32x12xf32>
    %58 = arith.mulf %56, %57 : vector<32x12xf32>
    %c5 = arith.constant 5 : index
    %c0_21 = arith.constant 0 : index
    %59 = vector.load %arg2[%c5, %c0_21] : memref<16x16xf32, #tpu.memory_space<vmem>>, vector<1x12xf32>
    %60 = vector.broadcast %59 : vector<1x12xf32> to vector<32x12xf32>
    %61 = arith.mulf %58, %60 : vector<32x12xf32>
    %c6 = arith.constant 6 : index
    %c0_22 = arith.constant 0 : index
    %62 = vector.load %arg2[%c6, %c0_22] : memref<16x16xf32, #tpu.memory_space<vmem>>, vector<1x12xf32>
    %63 = vector.broadcast %62 : vector<1x12xf32> to vector<32x12xf32>
    %64 = arith.addf %61, %63 : vector<32x12xf32>
    %cst_23 = arith.constant 0.000000e+00 : f32
    %65 = vector.broadcast %cst_23 : f32 to vector<32x12xf32>
    %66 = arith.maximumf %64, %65 : vector<32x12xf32>
    %67 = tpu.iota {dimensions = array<i32: 0>} : vector<32x1xi32>
    %cst_24 = arith.constant 0.000000e+00 : f32
    %68 = vector.broadcast %cst_24 : f32 to vector<1x12xf32>
    %69 = vector.extract_strided_slice %66 {offsets = [0, 0], sizes = [31, 12], strides = [1, 1]} : vector<32x12xf32> to vector<31x12xf32>
    %70 = tpu.concatenate %68, %69 in 0 : vector<1x12xf32>, vector<31x12xf32> -> vector<32x12xf32>
    %c16_i32 = arith.constant 16 : i32
    %c0_i32 = arith.constant 0 : i32
    %71 = arith.cmpi eq, %c16_i32, %c0_i32 : i32
    %c1_i32 = arith.constant 1 : i32
    %72 = arith.select %71, %c1_i32, %c16_i32 : i32
    %73 = vector.broadcast %72 : i32 to vector<32x1xi32>
    %74 = arith.remsi %67, %73 : vector<32x1xi32>
    %c0_i32_25 = arith.constant 0 : i32
    %75 = vector.broadcast %c0_i32_25 : i32 to vector<32x1xi32>
    %76 = arith.cmpi ne, %74, %75 : vector<32x1xi32>
    %c0_i32_26 = arith.constant 0 : i32
    %77 = vector.broadcast %c0_i32_26 : i32 to vector<32x1xi32>
    %78 = arith.cmpi slt, %74, %77 : vector<32x1xi32>
    %c0_i32_27 = arith.constant 0 : i32
    %79 = arith.cmpi slt, %72, %c0_i32_27 : i32
    %80 = vector.broadcast %79 : i1 to vector<32x1xi1>
    %81 = vector.broadcast %80 : vector<32x1xi1> to vector<32x1xi1>
    %82 = arith.xori %78, %81 : vector<32x1xi1>
    %83 = arith.andi %82, %76 : vector<32x1xi1>
    %84 = vector.broadcast %72 : i32 to vector<32x1xi32>
    %85 = arith.addi %74, %84 : vector<32x1xi32>
    %86 = arith.select %83, %85, %74 : vector<32x1xi1>, vector<32x1xi32>
    %c0_i32_28 = arith.constant 0 : i32
    %87 = vector.broadcast %c0_i32_28 : i32 to vector<32x1xi32>
    %88 = arith.cmpi eq, %86, %87 : vector<32x1xi32>
    %cst_29 = arith.constant 0.000000e+00 : f32
    %89 = vector.shape_cast %88 : vector<32x1xi1> to vector<32x1xi1>
    %90 = vector.broadcast %89 : vector<32x1xi1> to vector<32x12xi1>
    %91 = vector.broadcast %cst_29 : f32 to vector<32x12xf32>
    %92 = arith.select %90, %91, %70 : vector<32x12xi1>, vector<32x12xf32>
    %93 = vector.extract_strided_slice %66 {offsets = [1, 0], sizes = [31, 12], strides = [1, 1]} : vector<32x12xf32> to vector<31x12xf32>
    %94 = tpu.concatenate %93, %68 in 0 : vector<31x12xf32>, vector<1x12xf32> -> vector<32x12xf32>
    %c16_i32_30 = arith.constant 16 : i32
    %c0_i32_31 = arith.constant 0 : i32
    %95 = arith.cmpi eq, %c16_i32_30, %c0_i32_31 : i32
    %c1_i32_32 = arith.constant 1 : i32
    %96 = arith.select %95, %c1_i32_32, %c16_i32_30 : i32
    %97 = vector.broadcast %96 : i32 to vector<32x1xi32>
    %98 = arith.remsi %67, %97 : vector<32x1xi32>
    %c0_i32_33 = arith.constant 0 : i32
    %99 = vector.broadcast %c0_i32_33 : i32 to vector<32x1xi32>
    %100 = arith.cmpi ne, %98, %99 : vector<32x1xi32>
    %c0_i32_34 = arith.constant 0 : i32
    %101 = vector.broadcast %c0_i32_34 : i32 to vector<32x1xi32>
    %102 = arith.cmpi slt, %98, %101 : vector<32x1xi32>
    %c0_i32_35 = arith.constant 0 : i32
    %103 = arith.cmpi slt, %96, %c0_i32_35 : i32
    %104 = vector.broadcast %103 : i1 to vector<32x1xi1>
    %105 = vector.broadcast %104 : vector<32x1xi1> to vector<32x1xi1>
    %106 = arith.xori %102, %105 : vector<32x1xi1>
    %107 = arith.andi %106, %100 : vector<32x1xi1>
    %108 = vector.broadcast %96 : i32 to vector<32x1xi32>
    %109 = arith.addi %98, %108 : vector<32x1xi32>
    %110 = arith.select %107, %109, %98 : vector<32x1xi1>, vector<32x1xi32>
    %c15_i32 = arith.constant 15 : i32
    %111 = vector.broadcast %c15_i32 : i32 to vector<32x1xi32>
    %112 = arith.cmpi eq, %110, %111 : vector<32x1xi32>
    %cst_36 = arith.constant 0.000000e+00 : f32
    %113 = vector.shape_cast %112 : vector<32x1xi1> to vector<32x1xi1>
    %114 = vector.broadcast %113 : vector<32x1xi1> to vector<32x12xi1>
    %115 = vector.broadcast %cst_36 : f32 to vector<32x12xf32>
    %116 = arith.select %114, %115, %94 : vector<32x12xi1>, vector<32x12xf32>
    %117 = tpu.concatenate %92, %66, %116 in 1 : vector<32x12xf32>, vector<32x12xf32>, vector<32x12xf32> -> vector<32x36xf32>
    %c48 = arith.constant 48 : index
    %c0_37 = arith.constant 0 : index
    %118 = vector.load %arg1[%c48, %c0_37] : memref<96x12xf32, #tpu.memory_space<vmem>>, vector<36x4xf32>
    %cst_38 = arith.constant dense<0.000000e+00> : vector<32x4xf32>
    %119 = tpu.matmul %117, %118, %cst_38 {dimension_numbers = #tpu.dot_dimension_numbers<[1], [0], [0], [1], [0, 0, 1, 1], [], []>, precision = #tpu.contract_precision<fp32>} : vector<32x36xf32>, vector<36x4xf32>, vector<32x4xf32> -> vector<32x4xf32>
    %c7 = arith.constant 7 : index
    %c0_39 = arith.constant 0 : index
    %120 = vector.load %arg2[%c7, %c0_39] : memref<16x16xf32, #tpu.memory_space<vmem>>, vector<1x4xf32>
    %121 = vector.broadcast %120 : vector<1x4xf32> to vector<32x4xf32>
    %122 = arith.addf %119, %121 : vector<32x4xf32>
    %cst_40 = arith.constant dense<0.000000e+00> : vector<4xf32>
    %123 = vector.multi_reduction <add>, %122, %cst_40 [0] : vector<32x4xf32> to vector<4xf32>
    %124 = vector.shape_cast %123 : vector<4xf32> to vector<1x4xf32>
    %cst_41 = arith.constant 3.125000e-02 : f32
    %125 = vector.broadcast %cst_41 : f32 to vector<1x4xf32>
    %126 = arith.mulf %124, %125 : vector<1x4xf32>
    %127 = vector.broadcast %126 : vector<1x4xf32> to vector<32x4xf32>
    %128 = arith.subf %122, %127 : vector<32x4xf32>
    %129 = arith.mulf %128, %128 : vector<32x4xf32>
    %cst_42 = arith.constant dense<0.000000e+00> : vector<4xf32>
    %130 = vector.multi_reduction <add>, %129, %cst_42 [0] : vector<32x4xf32> to vector<4xf32>
    %131 = vector.shape_cast %130 : vector<4xf32> to vector<1x4xf32>
    %cst_43 = arith.constant 3.125000e-02 : f32
    %132 = vector.broadcast %cst_43 : f32 to vector<1x4xf32>
    %133 = arith.mulf %131, %132 : vector<1x4xf32>
    %cst_44 = arith.constant 9.99999974E-6 : f32
    %134 = vector.broadcast %cst_44 : f32 to vector<1x4xf32>
    %135 = arith.addf %133, %134 : vector<1x4xf32>
    %136 = math.rsqrt %135 : vector<1x4xf32>
    %137 = vector.broadcast %126 : vector<1x4xf32> to vector<32x4xf32>
    %138 = arith.subf %122, %137 : vector<32x4xf32>
    %139 = vector.broadcast %136 : vector<1x4xf32> to vector<32x4xf32>
    %140 = arith.mulf %138, %139 : vector<32x4xf32>
    %c8 = arith.constant 8 : index
    %c0_45 = arith.constant 0 : index
    %141 = vector.load %arg2[%c8, %c0_45] : memref<16x16xf32, #tpu.memory_space<vmem>>, vector<1x4xf32>
    %142 = vector.broadcast %141 : vector<1x4xf32> to vector<32x4xf32>
    %143 = arith.mulf %140, %142 : vector<32x4xf32>
    %c9 = arith.constant 9 : index
    %c0_46 = arith.constant 0 : index
    %144 = vector.load %arg2[%c9, %c0_46] : memref<16x16xf32, #tpu.memory_space<vmem>>, vector<1x4xf32>
    %145 = vector.broadcast %144 : vector<1x4xf32> to vector<32x4xf32>
    %146 = arith.addf %143, %145 : vector<32x4xf32>
    %cst_47 = arith.constant 0.000000e+00 : f32
    %147 = vector.broadcast %cst_47 : f32 to vector<32x4xf32>
    %148 = arith.maximumf %146, %147 : vector<32x4xf32>
    %c88 = arith.constant 88 : index
    %c0_48 = arith.constant 0 : index
    %149 = vector.load %arg1[%c88, %c0_48] : memref<96x12xf32, #tpu.memory_space<vmem>>, vector<4x12xf32>
    %cst_49 = arith.constant dense<0.000000e+00> : vector<32x12xf32>
    %150 = tpu.matmul %148, %149, %cst_49 {dimension_numbers = #tpu.dot_dimension_numbers<[1], [0], [0], [1], [0, 0, 1, 1], [], []>, precision = #tpu.contract_precision<fp32>} : vector<32x4xf32>, vector<4x12xf32>, vector<32x12xf32> -> vector<32x12xf32>
    %c10 = arith.constant 10 : index
    %c0_50 = arith.constant 0 : index
    %151 = vector.load %arg2[%c10, %c0_50] : memref<16x16xf32, #tpu.memory_space<vmem>>, vector<1x12xf32>
    %152 = vector.broadcast %151 : vector<1x12xf32> to vector<32x12xf32>
    %153 = arith.addf %150, %152 : vector<32x12xf32>
    %154 = arith.addf %153, %40 : vector<32x12xf32>
    %c0_51 = arith.constant 0 : index
    %c0_52 = arith.constant 0 : index
    %155 = vector.load %arg3[%c0_51, %c0_52] : memref<32x12xf32, #tpu.memory_space<vmem>>, vector<32x12xf32>
    tpu.vector_store %arg3[%c0_51, %c0_52], %154 {strides = array<i32>} : memref<32x12xf32, #tpu.memory_space<vmem>>, vector<32x12xf32>,
    return
  }
}

</mosaic_0001>

<bundles_post_ra>
// kernel: urblock_forward.1
= control target key start
LH: loop header
LB: loop body
LE: loop exit
PB: predicated region body
PF: predicated region fallthrough
CT: control target
= control target key end

     0   :  { %vm18_vm0 = vcmask 130048   ;;  %s2963_s12 = smov 32   ;;  %s2964_s13 = smov 16   ;;  %vm141_vm1 = vcmask 261120   ;;  %vm157_vm2 = vcmask 392192   ;;  %vm810_vm3 = vcmask 97280   ;;  %s3386_s0 = inlined_call_operand.vmem [shape: f32[32,16], index: 0, kind: input, shape index: {}]   ;;  %s3387_s1 = inlined_call_operand.vmem [shape: f32[96,12], index: 1, kind: input, shape index: {}]   ;;  %s3388_s2 = inlined_call_operand.vmem [shape: f32[16,16], index: 2, kind: input, shape index: {}]   ;;  %s3389_s3 = inlined_call_operand.vmem [shape: f32[32,12], index: 3, kind: output, shape index: {}]  }
   0x1   :  { %v2990_v0 = vld [vmem:[%s3386_s0] sm:$0xff]  ;;  %v2995_v1 = vld [vmem:[%s3386_s0 + $0x8] sm:$0xff]  ;;  %v3000_v2 = vld [vmem:[%s3386_s0 + $0x10] sm:$0xff]  ;;  %vm1050_vm4 = vcmask 1043456   ;;  %vm961_vm5 = vcmask 1046528   ;;  %vm884_vm7 = vcmask 1040384  }
   0x2   :  { %v3005_v3 = vld [vmem:[%s3386_s0 + $0x18] sm:$0xff]  ;;  %v19_v4 = vsel %vm18_vm0, %v2990_v0, 0.0  ;;  %v20_v5 = vsel %vm18_vm0, %v2995_v1, 0.0  ;;  %v22_v6 = vsel %vm18_vm0, %v3000_v2, 0.0  ;;  %v146_v41 = vld [vmem:[%s3387_s1] sm:$0xff]  ;;  %v147_v42 = vld [vmem:[%s3387_s1 + $0x8] sm:$0xff] }
   0x3   :  { %v21_v7 = vadd.f32 %v20_v5, %v19_v4  ;;  %v24_v8 = vsel %vm18_vm0, %v3005_v3, 0.0  ;;  %v171_v43 = vand.u32 4294901760, %v146_v41  ;;  %v174_v44 = vand.u32 4294901760, %v147_v42  ;;  %v148_v46 = vld [vmem:[%s3387_s1 + $0x10] sm:$0xff]  ;;  %v149_v47 = vld [vmem:[%s3387_s1 + $0x18] sm:$0xff]  ;;  %s2965_s29 = smov 12  }
   0x4   :  { %v2356_v49 = vld [vmem:[%s3388_s2 + $0x2] ss:$0 sm:$0xff]  ;;  %v2354_v50 = vld [vmem:[%s3388_s2] ss:$0 sm:$0xff]  ;;  %v177_v51 = vand.u32 4294901760, %v148_v46  ;;  %v180_v52 = vand.u32 4294901760, %v149_v47 }
   0x5   :  { %v23_v9 = vadd.f32 %v22_v6, %v21_v7  ;;  %v3029_v45 = vpack.c.bf16 %v174_v44, %v171_v43  ;;  %v2357_v57 = vld [vmem:[%s3388_s2 + $0x3] ss:$0 sm:$0xff]  ;;  %v2355_v58 = vld [vmem:[%s3388_s2 + $0x1] ss:$0 sm:$0xff]  ;;  %v3054_v6 = vsub.f32 %v146_v41, %v171_v43  ;;  %v3056_v7 = vsub.f32 %v147_v42, %v174_v44  ;;  %s2966_s30 = smov 24  }
   0x6   :  { %v3051_v59 = vpack.c.bf16 %v180_v52, %v177_v51  ;;  %vm1022_vm11 = vcmask 195584   ;;  %vm1037_vm12 = vcmask 293888   ;;  %vm1681_vm13 = vcmask 31744  }
   0x7   :  { %v25_v10 = vadd.f32 %v24_v8, %v23_v9  ;;  %2762 = vmatprep.subr.bf16.mxu0 %v3029_v45 }
   0x8   :  { %2764 = vmatpush3.bf16.msra.mxu0 %v3029_v45 }
   0x9   :  { %v26_v11 = vrot.slane %v25_v10, 4  ;;  %2766 = vmatprep.subr.bf16.mxu0 %v3051_v59 }
   0xb   :  { %v27_v12 = vadd.f32 %v26_v11, %v25_v10 }
   0xc   :  { %2768 = vmatpush3.bf16.msra.mxu0 %v3051_v59 }
   0xd   :  { %v28_v13 = vrot.slane %v27_v12, 2 }
   0xf   :  { %v29_v14 = vadd.f32 %v28_v13, %v27_v12 }
  0x11   :  { %v30_v15 = vrot.slane %v29_v14, 1 }
  0x13   :  { %v31_v16 = vadd.f32 %v30_v15, %v29_v14  ;;  %v150_v14 = vld [vmem:[%s3387_s1 + $0x20] sm:$0xff]  ;;  %v151_v15 = vld [vmem:[%s3387_s1 + $0x28] sm:$0xff] }
  0x15   :  { %v32_v17 = vmul.f32 0.03125, %v31_v16 }
  0x17   :  { %v33_v18 = vsub.f32 %v2990_v0, %v32_v17  ;;  %v34_v19 = vsub.f32 %v2995_v1, %v32_v17  ;;  %v35_v20 = vsub.f32 %v3000_v2, %v32_v17  ;;  %v36_v21 = vsub.f32 %v3005_v3, %v32_v17 }
  0x19   :  { %v37_v22 = vmul.f32 %v33_v18, %v33_v18  ;;  %v38_v23 = vmul.f32 %v34_v19, %v34_v19  ;;  %v39_v24 = vmul.f32 %v35_v20, %v35_v20  ;;  %v40_v25 = vmul.f32 %v36_v21, %v36_v21 }
  0x1b   :  { %v41_v26 = vsel %vm18_vm0, %v37_v22, 0.0  ;;  %v42_v27 = vsel %vm18_vm0, %v38_v23, 0.0  ;;  %v44_v28 = vsel %vm18_vm0, %v39_v24, 0.0  ;;  %v46_v30 = vsel %vm18_vm0, %v40_v25, 0.0 }
  0x1c   :  { %v43_v29 = vadd.f32 %v42_v27, %v41_v26  ;;  %v183_v22 = vand.u32 4294901760, %v150_v14  ;;  %v186_v23 = vand.u32 4294901760, %v151_v15  ;;  %v284_v24 = vand.u32 4294901760, %v3054_v6 }
  0x1d   :  { %v291_v25 = vand.u32 4294901760, %v3056_v7 }
  0x1e   :  { %v45_v31 = vadd.f32 %v44_v28, %v43_v29  ;;  %v297_v28 = vsub.f32 %v148_v46, %v177_v51  ;;  %v304_v29 = vsub.f32 %v149_v47, %v180_v52 }
  0x20   :  { %v47_v32 = vadd.f32 %v46_v30, %v45_v31  ;;  %v3069_v30 = vpack.c.bf16 %v186_v23, %v183_v22  ;;  %v285_v31 = vsub.f32 %v3054_v6, %v284_v24 }
  0x22   :  { %v48_v33 = vrot.slane %v47_v32, 4  ;;  %2770 = vmatprep.subr.bf16.mxu0 %v3069_v30 }
  0x23   :  { %2772 = vmatpush3.bf16.msra.mxu0 %v3069_v30 }
  0x24   :  { %v49_v34 = vadd.f32 %v48_v33, %v47_v32  ;;  %v292_v32 = vsub.f32 %v3056_v7, %v291_v25  ;;  %v311_v33 = vsub.f32 %v150_v14, %v183_v22 }
  0x26   :  { %v50_v35 = vrot.slane %v49_v34, 2  ;;  %v312_v41 = vand.u32 4294901760, %v311_v33 }
  0x28   :  { %v51_v36 = vadd.f32 %v50_v35, %v49_v34  ;;  %v298_v35 = vand.u32 4294901760, %v297_v28  ;;  %v313_v47 = vsub.f32 %v311_v33, %v312_v41 }
  0x2a   :  { %v52_v37 = vrot.slane %v51_v36, 1  ;;  %v299_v42 = vsub.f32 %v297_v28, %v298_v35 }
  0x2c   :  { %v53_v38 = vadd.f32 %v52_v37, %v51_v36  ;;  %v305_v36 = vand.u32 4294901760, %v304_v29  ;;  %v318_v37 = vsub.f32 %v151_v15, %v186_v23 }
  0x2e   :  { %v54_v39 = vmul.f32 0.03125, %v53_v38  ;;  %v306_v43 = vsub.f32 %v304_v29, %v305_v36  ;;  %v319_v44 = vand.u32 4294901760, %v318_v37 }
  0x30   :  { %v55_v40 = vadd.f32 1e-05, %v54_v39  ;;  %v286_v39 = vand.u32 4294901760, %v285_v31 }
  0x32   :  { %2957 = vrsqrt.f32 %v55_v40  ;;  %v293_v40 = vand.u32 4294901760, %v292_v32 }
  0x34   :  { %v2773_v46 = vpack.c.bf16 %v293_v40, %v286_v39 }
  0x36   :  { %2774 = vmatprep.subr.bf16.mxu0 %v2773_v46 }
  0x3c   :  { %v2958_v48 = vpop.eup %2957 }
  0x3d   :  { %v57_v53 = vmul.f32 %v2958_v48, %v33_v18  ;;  %v58_v54 = vmul.f32 %v2958_v48, %v34_v19  ;;  %v60_v55 = vmul.f32 %v2958_v48, %v36_v21  ;;  %v59_v56 = vmul.f32 %v2958_v48, %v35_v20 }
  0x3e   :  { %v300_v48 = vand.u32 4294901760, %v299_v42 }
  0x3f   :  { %v88_v60 = vmul.f32 %v2356_v49, %v57_v53  ;;  %v66_v61 = vmul.f32 %v2354_v50, %v57_v53  ;;  %v89_v62 = vmul.f32 %v2356_v49, %v58_v54  ;;  %v67_v63 = vmul.f32 %v2354_v50, %v58_v54 }
  0x40   :  { %v69_v4 = vmul.f32 %v2354_v50, %v60_v55  ;;  %v68_v5 = vmul.f32 %v2354_v50, %v59_v56  ;;  %v91_v12 = vmul.f32 %v2356_v49, %v60_v55  ;;  %v90_v13 = vmul.f32 %v2356_v49, %v59_v56 }
  0x41   :  { %v97_v8 = vadd.f32 %v2357_v57, %v88_v60  ;;  %v75_v9 = vadd.f32 %v2355_v58, %v66_v61  ;;  %v98_v10 = vadd.f32 %v2357_v57, %v89_v62  ;;  %v76_v11 = vadd.f32 %v2355_v58, %v67_v63 }
  0x42   :  { %v78_v20 = vadd.f32 %v2355_v58, %v69_v4  ;;  %v77_v21 = vadd.f32 %v2355_v58, %v68_v5  ;;  %v100_v26 = vadd.f32 %v2357_v57, %v91_v12  ;;  %v99_v27 = vadd.f32 %v2357_v57, %v90_v13 }
  0x43   :  { %v101_v16 = vmax.f32 %v97_v8, 0.0  ;;  %v79_v17 = vmax.f32 %v75_v9, 0.0  ;;  %v102_v18 = vmax.f32 %v98_v10, 0.0  ;;  %v80_v19 = vmax.f32 %v76_v11, 0.0 }
  0x44   :  { %v82_v34 = vmax.f32 %v78_v20, 0.0  ;;  %v81_v38 = vmax.f32 %v77_v21, 0.0  ;;  %v307_v49 = vand.u32 4294901760, %v306_v43  ;;  %v320_v50 = vsub.f32 %v318_v37, %v319_v44 }
  0x45   :  { %125 = vrot.lane.b32.xlu1 %v101_v16, %s2963_s12  ;;  %109 = vrot.lane.b32.xlu0 %v79_v17, %s2964_s13  ;;  %v104_v51 = vmax.f32 %v100_v26, 0.0  ;;  %v103_v52 = vmax.f32 %v99_v27, 0.0  ;;  %v314_v53 = vand.u32 4294901760, %v313_v47  ;;  %v2785_v57 = vpack.c.bf16 %v3056_v7, %v3054_v6 }
  0x46   :  { %v2777_v54 = vpack.c.bf16 %v307_v49, %v300_v48  ;;  %v321_v55 = vand.u32 4294901760, %v320_v50  ;;  %v2789_v58 = vpack.c.bf16 %v304_v29, %v297_v28  ;;  %v3083_v60 = vpack.c.bf16 %v318_v37, %v311_v33 }
  0x47   :  { %v3085_v61 = vpack.c.bf16 %v291_v25, %v284_v24  ;;  %v3087_v62 = vpack.c.bf16 %v305_v36, %v298_v35  ;;  %v3089_v63 = vpack.c.bf16 %v319_v44, %v312_v41  ;;  %v1027_v41 = vld [vmem:[%s3387_s1 + $0x30] sm:$0xff] }
  0x48   :  { %v2781_v56 = vpack.c.bf16 %v321_v55, %v314_v53  ;;  %v1055_v42 = vand.u32 4294901760, %v1027_v41  ;;  %v2358_v53 = vld [vmem:[%s3388_s2 + $0x4] ss:$0 sm:$0xff] }
  0x49   :  { %127 = vrot.lane.b32.xlu1 %v102_v18, %s2963_s12  ;;  %111 = vrot.lane.b32.xlu0 %v80_v19, %s2964_s13 }
  0x4a   :  { %v3147_v44 = vsub.f32 %v1027_v41, %v1055_v42 }
  0x4d   :  { %115 = vrot.lane.b32.xlu1 %v82_v34, %s2964_s13  ;;  %113 = vrot.lane.b32.xlu0 %v81_v38, %s2964_s13 }
  0x51   :  { %131 = vrot.lane.b32.xlu1 %v104_v51, %s2963_s12  ;;  %129 = vrot.lane.b32.xlu0 %v103_v52, %s2963_s12 }
  0xb7   :  { %v126_v4 = vpop.permute.xlu1 %125  ;;  %v110_v5 = vpop.permute.xlu0 %109 }
  0xb8   :  { %v137_v8 = vsel %vm18_vm0, %v2990_v0, %v110_v5 }
  0xb9   :  { %v142_v9 = vsel %vm141_vm1, %v137_v8, %v126_v4 }
  0xba   :  { %v159_v6 = vsel %vm157_vm2, %v142_v9, 0 }
  0xbb   :  { %v3095_v7 = vand.u32 4294901760, %v159_v6  ;;  %v128_v10 = vpop.permute.xlu1 %127  ;;  %v112_v11 = vpop.permute.xlu0 %111 }
  0xbc   :  { %v138_v12 = vsel %vm18_vm0, %v2995_v1, %v112_v11 }
  0xbd   :  { %v143_v13 = vsel %vm141_vm1, %v138_v12, %v128_v10  ;;  %v242_v14 = vsub.f32 %v159_v6, %v3095_v7 }
  0xbe   :  { %v162_v15 = vsel %vm157_vm2, %v143_v13, 0 }
  0xbf   :  { %v3102_v16 = vand.u32 4294901760, %v162_v15  ;;  %v116_v0 = vpop.permute.xlu1 %115  ;;  %v114_v17 = vpop.permute.xlu0 %113  ;;  %v243_v18 = vand.u32 4294901760, %v242_v14 }
  0xc0   :  { %v140_v21 = vsel %vm18_vm0, %v3005_v3, %v116_v0  ;;  %v139_v1 = vsel %vm18_vm0, %v3000_v2, %v114_v17 }
  0xc1   :  { %v252_v19 = vsub.f32 %v162_v15, %v3102_v16  ;;  %v244_v20 = vsub.f32 %v242_v14, %v243_v18 }
  0xc3   :  { %v132_v22 = vpop.permute.xlu1 %131  ;;  %v130_v23 = vpop.permute.xlu0 %129  ;;  %v245_v24 = vand.u32 4294901760, %v244_v20  ;;  %v253_v25 = vand.u32 4294901760, %v252_v19 }
  0xc4   :  { %v145_v26 = vsel %vm141_vm1, %v140_v21, %v132_v22  ;;  %v144_v27 = vsel %vm141_vm1, %v139_v1, %v130_v23 }
  0xc5   :  { %v168_v28 = vsel %vm157_vm2, %v145_v26, 0  ;;  %v165_v29 = vsel %vm157_vm2, %v144_v27, 0  ;;  %2521 = vmatprep.mubr.f32.mxu0 %v245_v24  ;;  %v254_v31 = vsub.f32 %v252_v19, %v253_v25 }
  0xc6   :  { %v271_v32 = vand.u32 4294901760, %v168_v28  ;;  %v261_v33 = vand.u32 4294901760, %v165_v29 }
  0xc7   :  { %v255_v3 = vand.u32 4294901760, %v254_v31 }
  0xc8   :  { %v272_v34 = vsub.f32 %v168_v28, %v271_v32  ;;  %v262_v35 = vsub.f32 %v165_v29, %v261_v33 }
  0xc9   :  { %2522 = vmatmul.mubr.f32.vlgmr.msra.gmra.mrb[0].mxu0 %v255_v3 }
  0xca   :  { %2776 = vmatpush3.bf16.msra.mxu0 %v2773_v46  ;;  %v263_v2 = vand.u32 4294901760, %v262_v35  ;;  %v273_v36 = vand.u32 4294901760, %v272_v34 }
  0xcb   :  { %2778 = vmatprep.subr.bf16.mxu0 %v2777_v54 }
  0xcc   :  { %v264_v37 = vsub.f32 %v262_v35, %v263_v2  ;;  %v274_v38 = vsub.f32 %v272_v34, %v273_v36 }
  0xce   :  { %2780 = vmatpush3.bf16.msra.mxu0 %v2777_v54  ;;  %v265_v39 = vand.u32 4294901760, %v264_v37  ;;  %v275_v40 = vand.u32 4294901760, %v274_v38  ;;  %v1030_v37 = vld [vmem:[%s3387_s1 + $0x48] sm:$0xff] }
  0xcf   :  { %2782 = vmatprep.subr.bf16.mxu0 %v2781_v56 }
  0xd0   :  { %2524 = vmatprep.mubr.f32.mxu0 %v265_v39 }
  0xd1   :  { %2525 = vmatmul.mubr.f32.gmra.mrb[2].mxu0 %v275_v40  ;;  %v1064_v40 = vand.u32 4294901760, %v1030_v37 }
  0xd2   :  { %2784 = vmatpush3.bf16.msra.mxu0 %v2781_v56  ;;  %2539 = vmatprep.mubr.f32.mxu0 %v3095_v7 }
  0xd3   :  { %2786 = vmatprep.subr.bf16.mxu0 %v2785_v57 }
  0xd5   :  { %2540 = vmatmul.mubr.f32.vlgmr.msra.gmra.mrb[0].mxu0 %v3102_v16 }
  0xd6   :  { %2788 = vmatpush3.bf16.msra.mxu0 %v2785_v57  ;;  %2542 = vmatprep.mubr.f32.mxu0 %v261_v33 }
  0xd7   :  { %2790 = vmatprep.subr.bf16.mxu0 %v2789_v58 }
  0xd9   :  { %2543 = vmatmul.mubr.f32.gmra.mrb[2].mxu0 %v271_v32 }
  0xda   :  { %2792 = vmatpush3.bf16.msra.mxu0 %v2789_v58  ;;  %2557 = vmatprep.mubr.f32.mxu0 %v242_v14 }
  0xdb   :  { %2794 = vmatprep.subr.bf16.mxu0 %v3083_v60 }
  0xde   :  { %2796 = vmatpush3.bf16.msra.mxu0 %v3083_v60 }
  0xdf   :  { %2798 = vmatprep.subr.bf16.mxu0 %v3029_v45 }
  0xe1   :  { %2558 = vmatmul.mubr.f32.vlgmr.msra.gmra.mrb[0].mxu0 %v252_v19 }
  0xe2   :  { %2560 = vmatprep.mubr.f32.mxu0 %v262_v35  ;;  %2800 = vmatpush3.bf16.msra.mxu0 %v3029_v45 }
  0xe3   :  { %2802 = vmatprep.subr.bf16.mxu0 %v3051_v59 }
  0xe5   :  { %2561 = vmatmul.mubr.f32.gmra.mrb[2].mxu0 %v272_v34 }
  0xe6   :  { %2804 = vmatpush3.bf16.msra.mxu0 %v3051_v59  ;;  %2575 = vmatprep.mubr.f32.mxu0 %v243_v18 }
  0xe7   :  { %2806 = vmatprep.subr.bf16.mxu0 %v3069_v30 }
  0xea   :  { %2808 = vmatpush3.bf16.msra.mxu0 %v3069_v30 }
  0xeb   :  { %2810 = vmatprep.subr.bf16.mxu0 %v3085_v61 }
  0xed   :  { %2576 = vmatmul.mubr.f32.vlgmr.msra.gmra.mrb[0].mxu0 %v253_v25 }
  0xee   :  { %2578 = vmatprep.mubr.f32.mxu0 %v263_v2  ;;  %2812 = vmatpush3.bf16.msra.mxu0 %v3085_v61 }
  0xef   :  { %2814 = vmatprep.subr.bf16.mxu0 %v3087_v62 }
  0xf1   :  { %2579 = vmatmul.mubr.f32.gmra.mrb[2].mxu0 %v273_v36  ;;  %v1029_v36 = vld [vmem:[%s3387_s1 + $0x40] sm:$0xff] }
  0xf2   :  { %2816 = vmatpush3.bf16.msra.mxu0 %v3087_v62  ;;  %2593 = vmatprep.mubr.f32.mxu0 %v3095_v7  ;;  %v1061_v39 = vand.u32 4294901760, %v1029_v36 }
  0xf3   :  { %2818 = vmatprep.subr.bf16.mxu0 %v3089_v63 }
  0xf4   :  { %v3194_v41 = vsub.f32 %v1029_v36, %v1061_v39 }
  0xf6   :  { %2820 = vmatpush3.bf16.msra.mxu0 %v3089_v63 }
  0xf7   :  { %2822 = vmatprep.subr.bf16.mxu0 %v3029_v45 }
  0xf9   :  { %2594 = vmatmul.mubr.f32.vlgmr.msra.gmra.mrb[0].mxu0 %v3102_v16 }
  0xfa   :  { %2596 = vmatprep.mubr.f32.mxu0 %v261_v33  ;;  %2824 = vmatpush3.bf16.msra.mxu0 %v3029_v45  ;;  %v1028_v45 = vld [vmem:[%s3387_s1 + $0x38] sm:$0xff] }
  0xfb   :  { %2826 = vmatprep.subr.bf16.mxu0 %v3051_v59 }
  0xfd   :  { %2597 = vmatmul.mubr.f32.gmra.mrb[2].mxu0 %v271_v32 }
  0xfe   :  { %2828 = vmatpush3.bf16.msra.mxu0 %v3051_v59  ;;  %2611 = vmatprep.mubr.f32.mxu0 %v3095_v7  ;;  %v1058_v59 = vand.u32 4294901760, %v1028_v45 }
  0xff   :  { %2830 = vmatprep.subr.bf16.mxu0 %v3069_v30 }
 0x100   :  { %v3145_v43 = vpack.c.bf16 %v1058_v59, %v1055_v42  ;;  %v3149_v46 = vsub.f32 %v1028_v45, %v1058_v59  ;;  %v3196_v45 = vsub.f32 %v1030_v37, %v1064_v40  ;;  %v875_v42 = vlaneseq }
 0x101   :  { %v1181_v59 = vand.u32 4294901760, %v3194_v41 }
 0x102   :  { %2832 = vmatpush3.bf16.msra.mxu0 %v3069_v30  ;;  %v1167_v30 = vand.u32 4294901760, %v3147_v44  ;;  %v1174_v47 = vand.u32 4294901760, %v3149_v46 }
 0x103   :  { %2834 = vmatprep.subr.bf16.mxu0 %v3145_v43 }
 0x104   :  { %v1168_v48 = vsub.f32 %v3147_v44, %v1167_v30  ;;  %v1175_v49 = vsub.f32 %v3149_v46, %v1174_v47 }
 0x105   :  { %2612 = vmatmul.mubr.f32.vlgmr.msra.gmra.mrb[0].mxu0 %v3102_v16 }
 0x106   :  { %2614 = vmatprep.mubr.f32.mxu0 %v261_v33  ;;  %2836 = vmatpush3.bf16.msra.mxu0 %v3145_v43  ;;  %v1169_v50 = vand.u32 4294901760, %v1168_v48  ;;  %v1176_v51 = vand.u32 4294901760, %v1175_v49  ;;  %v1188_v48 = vand.u32 4294901760, %v3196_v45  ;;  %v1031_v49 = vld [vmem:[%s3387_s1 + $0x50] sm:$0xf] }
 0x108   :  { %v2841_v52 = vpack.c.bf16 %v1176_v51, %v1169_v50  ;;  %v1052_v50 = vsel %vm1050_vm4, %v1031_v49, 0  ;;  %v1182_v51 = vsub.f32 %v3194_v41, %v1181_v59 }
 0x109   :  { %2615 = vmatmul.mubr.f32.gmra.mrb[2].mxu0 %v271_v32 }
 0x10a   :  { %2842 = vmatprep.subr.bf16.mxu1 %v2841_v52 }
 0x10b   :  { %2844 = vmatpush3.bf16.msra.mxu1 %v2841_v52  ;;  %v1189_v52 = vsub.f32 %v3196_v45, %v1188_v48 }
 0x1d8   :  { %v2613_v54 = vpop.f32.mrb[0].mxu0 }
 0x1d9   :  { %v3164_v55 = vadd.f32 %v2613_v54, %v2358_v53  ;;  %v788_v56 = vpop.f32.mrb[1].mxu0  ;;  %v876_v54 = vshrl.u32 %v875_v42, 7 }
 0x1da   :  { %v3166_v57 = vadd.f32 %v2358_v53, %v788_v56  ;;  %v3212_v56 = vpack.c.bf16 %v1064_v40, %v1061_v39 }
 0x1db   :  { %v812_v58 = vsel %vm810_vm3, %v3164_v55, 0.0 }
 0x1dc   :  { %v811_v60 = vsel %vm810_vm3, %v3166_v57, 0.0  ;;  %v2616_v61 = vpop.f32.mrb[2].mxu0  ;;  %2838 = vmatprep.subr.bf16.mxu0 %v3212_v56 }
 0x1dd   :  { %v800_v62 = vpop.f32.mrb[3].mxu0  ;;  %v3172_v63 = vadd.f32 %v2616_v61, %v2358_v53  ;;  %v813_v5 = vadd.f32 %v812_v58, %v811_v60  ;;  %v1183_v58 = vand.u32 4294901760, %v1182_v51  ;;  %v1190_v60 = vand.u32 4294901760, %v1189_v52  ;;  %2840 = vmatpush3.bf16.msra.mxu0 %v3212_v56 }
 0x1de   :  { %v3174_v4 = vadd.f32 %v2358_v53, %v800_v62  ;;  %v3210_v53 = vand.u32 4294901760, %v1052_v50 }
 0x1df   :  { %v816_v6 = vsel %vm810_vm3, %v3172_v63, 0.0  ;;  %v2845_v62 = vpack.c.bf16 %v1190_v60, %v1183_v58 }
 0x1e0   :  { %v814_v8 = vsel %vm810_vm3, %v3174_v4, 0.0  ;;  %v3215_v61 = vsub.f32 %v1052_v50, %v3210_v53  ;;  %2625 = vmatprep.subr.mxu0 %v3210_v53 }
 0x1e1   :  { %v815_v9 = vadd.f32 %v814_v8, %v813_v5  ;;  %2846 = vmatprep.subr.bf16.mxu1 %v2845_v62  ;;  %2626 = vmatpush3.msra.mxu0 %v3210_v53 }
 0x1e2   :  { %v3219_v5 = vand.u32 4294901760, %v3215_v61  ;;  %2848 = vmatpush3.bf16.msra.mxu1 %v2845_v62 }
 0x1e3   :  { %v817_v7 = vadd.f32 %v816_v6, %v815_v9  ;;  %v2359_v9 = vld [vmem:[%s3388_s2 + $0x5] ss:$0 sm:$0xff]  ;;  %v877_v6 = vadd.s32 8, %v876_v54 }
 0x1e5   :  { %v818_v10 = vrot.slane %v817_v7, 4 }
 0x1e7   :  { %v819_v11 = vadd.f32 %v818_v10, %v817_v7 }
 0x1e9   :  { %v820_v12 = vrot.slane %v819_v11, 2 }
 0x1eb   :  { %v821_v13 = vadd.f32 %v820_v12, %v819_v11 }
 0x1ed   :  { %v822_v14 = vrot.slane %v821_v13, 1 }
 0x1ef   :  { %v823_v15 = vadd.f32 %v822_v14, %v821_v13  ;;  %v2360_v13 = vld [vmem:[%s3388_s2 + $0x6] ss:$0 sm:$0xff]  ;;  %v1196_v14 = vsub.f32 %v3215_v61, %v3219_v5 }
 0x1f1   :  { %v824_v16 = vmul.f32 0.03125, %v823_v15  ;;  %v878_v15 = vadd.s32 16, %v876_v54 }
 0x1f3   :  { %v825_v0 = vsub.f32 %v3166_v57, %v824_v16  ;;  %v826_v17 = vsub.f32 %v3164_v55, %v824_v16  ;;  %v827_v18 = vsub.f32 %v3174_v4, %v824_v16  ;;  %v828_v19 = vsub.f32 %v3172_v63, %v824_v16 }
 0x1f5   :  { %v829_v20 = vmul.f32 %v825_v0, %v825_v0  ;;  %v830_v21 = vmul.f32 %v826_v17, %v826_v17  ;;  %v831_v1 = vmul.f32 %v827_v18, %v827_v18  ;;  %v832_v22 = vmul.f32 %v828_v19, %v828_v19 }
 0x1f7   :  { %v833_v23 = vsel %vm810_vm3, %v829_v20, 0.0  ;;  %v834_v24 = vsel %vm810_vm3, %v830_v21, 0.0  ;;  %v836_v26 = vsel %vm810_vm3, %v831_v1, 0.0  ;;  %v838_v28 = vsel %vm810_vm3, %v832_v22, 0.0 }
 0x1f8   :  { %v835_v25 = vadd.f32 %v834_v24, %v833_v23  ;;  %v908_v22 = vand.u32 15, %v877_v6 }
 0x1fa   :  { %v837_v27 = vadd.f32 %v836_v26, %v835_v25  ;;  %v879_v25 = vadd.s32 24, %v876_v54  ;;  %v915_v26 = vand.u32 15, %v878_v15  ;;  %vm3236_vm6 = vcmp.eq.s32.totalorder %v908_v22, 15 }
 0x1fc   :  { %v839_v29 = vadd.f32 %v838_v28, %v837_v27  ;;  %v3234_v27 = vpack.c.bf16 %v3149_v46, %v3147_v44  ;;  %v922_v49 = vand.u32 15, %v879_v25  ;;  %vm3247_vm9 = vcmp.eq.s32.totalorder %v915_v26, 0  ;;  %v1746_v44 = vld [vmem:[%s3387_s1 + $0x58] sm:$0xf] }
 0x1fe   :  { %v840_v31 = vrot.slane %v839_v29, 4  ;;  %vm977_vm10 = vcmp.eq.s32.totalorder %v922_v49, 15 }
 0x200   :  { %v841_v32 = vadd.f32 %v840_v31, %v839_v29 }
 0x202   :  { %v842_v33 = vrot.slane %v841_v32, 2 }
 0x204   :  { %v843_v3 = vadd.f32 %v842_v33, %v841_v32 }
 0x206   :  { %v844_v34 = vrot.slane %v843_v3, 1 }
 0x208   :  { %v845_v35 = vadd.f32 %v844_v34, %v843_v3 }
 0x20a   :  { %v846_v2 = vmul.f32 0.03125, %v845_v35 }
 0x20c   :  { %v847_v38 = vadd.f32 1e-05, %v846_v2 }
 0x20e   :  { %2959 = vrsqrt.f32 %v847_v38 }
 0x218   :  { %v2960_v8 = vpop.eup %2959 }
 0x219   :  { %v851_v7 = vmul.f32 %v2960_v8, %v827_v18  ;;  %v850_v10 = vmul.f32 %v2960_v8, %v826_v17  ;;  %v849_v11 = vmul.f32 %v2960_v8, %v825_v0  ;;  %v852_v12 = vmul.f32 %v2960_v8, %v828_v19 }
 0x21a   :  { %v901_v18 = vand.u32 15, %v876_v54  ;;  %v1197_v17 = vand.u32 4294901760, %v1196_v14 }
 0x21b   :  { %v860_v16 = vmul.f32 %v2359_v9, %v851_v7  ;;  %v859_v20 = vmul.f32 %v2359_v9, %v850_v10  ;;  %v858_v21 = vmul.f32 %v2359_v9, %v849_v11  ;;  %v861_v1 = vmul.f32 %v2359_v9, %v852_v12 }
 0x21c   :  { %2641 = vmatprep.subr.mxu1 %v1197_v17  ;;  %vm3241_vm8 = vcmp.eq.s32.totalorder %v901_v18, 0  ;;  %v2853_v9 = vpack.c.bf16 %v3196_v45, %v3194_v41  ;;  %v3269_v12 = vpack.c.bf16 %v1188_v48, %v1181_v59 }
 0x21d   :  { %v868_v0 = vadd.f32 %v2360_v13, %v859_v20  ;;  %v867_v19 = vadd.f32 %v2360_v13, %v858_v21  ;;  %v869_v23 = vadd.f32 %v2360_v13, %v860_v16  ;;  %v870_v24 = vadd.f32 %v2360_v13, %v861_v1  ;;  %2642 = vmatpush3.msra.mxu1 %v1197_v17 }
 0x21e   :  { %2850 = vmatprep.subr.bf16.mxu1 %v3234_v27 }
 0x21f   :  { %v872_v28 = vmax.f32 %v868_v0, 0.0  ;;  %v871_v29 = vmax.f32 %v867_v19, 0.0  ;;  %v873_v31 = vmax.f32 %v869_v23, 0.0  ;;  %v874_v32 = vmax.f32 %v870_v24, 0.0 }
 0x221   :  { %992 = vrot.lane.b32.xlu1 %v872_v28, %s2965_s29  ;;  %990 = vrot.lane.b32.xlu0 %v871_v29, %s2965_s29  ;;  %v963_v3 = vrot.slane %v872_v28, 1  ;;  %v965_v34 = vrot.slane %v873_v31, 1  ;;  %v962_v35 = vrot.slane %v871_v29, 1  ;;  %v885_v36 = vrot.slane %v871_v29, 7 }
 0x222   :  { %v886_v37 = vrot.slane %v872_v28, 7  ;;  %v888_v38 = vrot.slane %v873_v31, 7  ;;  %v890_v39 = vrot.slane %v874_v32, 7  ;;  %v967_v52 = vrot.slane %v874_v32, 1 }
 0x223   :  { %v966_v40 = vsel %vm961_vm5, %v963_v3, %v965_v34  ;;  %v964_v42 = vsel %vm961_vm5, %v962_v35, %v963_v3  ;;  %v896_v58 = vsel %vm884_vm7, 0.0, %v885_v36 }
 0x224   :  { %v987_v51 = vsel %vm3236_vm6, 0.0, %v966_v40  ;;  %v887_v54 = vsel %vm884_vm7, %v885_v36, %v886_v37  ;;  %v957_v60 = vsel %vm3241_vm8, 0.0, %v896_v58  ;;  %v891_v62 = vsel %vm884_vm7, %v888_v38, %v890_v39 }
 0x225   :  { %1008 = vrot.lane.b32.xlu1 %v987_v51, %s2966_s30  ;;  %1006 = vrot.lane.b32.xlu0 %v964_v42, %s2966_s30  ;;  %v889_v8 = vsel %vm884_vm7, %v886_v37, %v888_v38  ;;  %v973_v7 = vsel %vm961_vm5, %v967_v52, 0.0  ;;  %v968_v11 = vsel %vm961_vm5, %v965_v34, %v967_v52 }
 0x226   :  { %v959_v6 = vsel %vm3247_vm9, 0.0, %v889_v8  ;;  %v989_v10 = vsel %vm977_vm10, 0.0, %v973_v7 }
 0x229   :  { %996 = vrot.lane.b32.xlu1 %v874_v32, %s2965_s29  ;;  %994 = vrot.lane.b32.xlu0 %v873_v31, %s2965_s29 }
 0x22d   :  { %1012 = vrot.lane.b32.xlu1 %v989_v10, %s2966_s30  ;;  %1010 = vrot.lane.b32.xlu0 %v968_v11, %s2966_s30 }
 0x293   :  { %v993_v13 = vpop.permute.xlu1 %992  ;;  %v991_v14 = vpop.permute.xlu0 %990 }
 0x294   :  { %v1019_v15 = vsel %vm810_vm3, %v887_v54, %v993_v13  ;;  %v1018_v16 = vsel %vm810_vm3, %v957_v60, %v991_v14 }
 0x297   :  { %v1009_v20 = vpop.permute.xlu1 %1008  ;;  %v1007_v21 = vpop.permute.xlu0 %1006 }
 0x298   :  { %v1024_v1 = vsel %vm1022_vm11, %v1019_v15, %v1009_v20  ;;  %v1023_v22 = vsel %vm1022_vm11, %v1018_v16, %v1007_v21 }
 0x299   :  { %v1042_v41 = vsel %vm1037_vm12, %v1024_v1, 0  ;;  %v1039_v45 = vsel %vm1037_vm12, %v1023_v22, 0 }
 0x29a   :  { %v3277_v59 = vand.u32 4294901760, %v1042_v41  ;;  %v3279_v48 = vand.u32 4294901760, %v1039_v45 }
 0x29b   :  { %v997_v18 = vpop.permute.xlu1 %996  ;;  %v995_v17 = vpop.permute.xlu0 %994 }
 0x29c   :  { %v1135_v0 = vsub.f32 %v1042_v41, %v3277_v59  ;;  %v1125_v19 = vsub.f32 %v1039_v45, %v3279_v48  ;;  %2643 = vmatprep.mubr.f32.mxu1 %v3279_v48  ;;  %v1021_v25 = vsel %vm810_vm3, %v891_v62, %v997_v18  ;;  %v1020_v26 = vsel %vm810_vm3, %v959_v6, %v995_v17  ;;  %v2361_v62 = vld [vmem:[%s3388_s2 + $0x7] ss:$0 sm:$0xff] }
 0x29d   :  { %2644 = vmatmul.mubr.f32.vlgmr.msra.gmra.mrb[0].mxu1 %v3277_v59 }
 0x29e   :  { %v1136_v23 = vand.u32 4294901760, %v1135_v0  ;;  %2852 = vmatpush3.bf16.msra.mxu1 %v3234_v27  ;;  %v1126_v24 = vand.u32 4294901760, %v1125_v19 }
 0x29f   :  { %v1013_v28 = vpop.permute.xlu1 %1012  ;;  %v1011_v29 = vpop.permute.xlu0 %1010  ;;  %2854 = vmatprep.subr.bf16.mxu1 %v2853_v9 }
 0x2a0   :  { %v1137_v31 = vsub.f32 %v1135_v0, %v1136_v23  ;;  %v1026_v32 = vsel %vm1022_vm11, %v1021_v25, %v1013_v28  ;;  %v1025_v33 = vsel %vm1022_vm11, %v1020_v26, %v1011_v29  ;;  %v1127_v3 = vsub.f32 %v1125_v19, %v1126_v24 }
 0x2a1   :  { %v1048_v34 = vsel %vm1037_vm12, %v1026_v32, 0  ;;  %v1045_v35 = vsel %vm1037_vm12, %v1025_v33, 0 }
 0x2a2   :  { %v1138_v2 = vand.u32 4294901760, %v1137_v31  ;;  %v1154_v27 = vand.u32 4294901760, %v1048_v34  ;;  %v1144_v36 = vand.u32 4294901760, %v1045_v35  ;;  %2856 = vmatpush3.bf16.msra.mxu1 %v2853_v9  ;;  %v1128_v37 = vand.u32 4294901760, %v1127_v3 }
 0x2a3   :  { %2657 = vmatprep.subr.mxu1 %v3215_v61 }
 0x2a4   :  { %v1155_v38 = vsub.f32 %v1048_v34, %v1154_v27  ;;  %v1145_v39 = vsub.f32 %v1045_v35, %v1144_v36  ;;  %2627 = vmatprep.mubr.f32.mxu0 %v1128_v37  ;;  %2646 = vmatprep.mubr.f32.mxu1 %v1144_v36 }
 0x2a5   :  { %2628 = vmatmul.mubr.f32.vlgmr.msra.gmra.mrb[4].mxu0 %v1138_v2  ;;  %2647 = vmatmul.mubr.f32.gmra.mrb[2].mxu1 %v1154_v27 }
 0x2a6   :  { %2659 = vmatprep.mubr.f32.mxu1 %v1125_v19  ;;  %2658 = vmatpush3.msra.mxu1 %v3215_v61  ;;  %v1146_v40 = vand.u32 4294901760, %v1145_v39  ;;  %v1156_v42 = vand.u32 4294901760, %v1155_v38  ;;  %v2865_v61 = vpack.c.bf16 %v1174_v47, %v1167_v30 }
 0x2a7   :  { %2858 = vmatprep.subr.bf16.mxu1 %v3145_v43 }
 0x2a8   :  { %v1147_v49 = vsub.f32 %v1145_v39, %v1146_v40  ;;  %v1157_v50 = vsub.f32 %v1155_v38, %v1156_v42 }
 0x2a9   :  { %2660 = vmatmul.mubr.f32.vlgmr.msra.gmra.mrb[0].mxu1 %v1135_v0 }
 0x2aa   :  { %2860 = vmatpush3.bf16.msra.mxu1 %v3145_v43  ;;  %2662 = vmatprep.mubr.f32.mxu1 %v1145_v39  ;;  %v1148_v51 = vand.u32 4294901760, %v1147_v49  ;;  %v1158_v52 = vand.u32 4294901760, %v1157_v50 }
 0x2ab   :  { %2862 = vmatprep.subr.bf16.mxu1 %v3212_v56 }
 0x2ac   :  { %2630 = vmatprep.mubr.f32.mxu0 %v1148_v51 }
 0x2ad   :  { %2631 = vmatmul.mubr.f32.gmra.mrb[6].mxu0 %v1158_v52  ;;  %2663 = vmatmul.mubr.f32.gmra.mrb[2].mxu1 %v1155_v38 }
 0x2ae   :  { %2864 = vmatpush3.bf16.msra.mxu1 %v3212_v56  ;;  %2675 = vmatprep.mubr.f32.mxu1 %v1126_v24 }
 0x2af   :  { %2673 = vmatprep.subr.mxu1 %v3210_v53 }
 0x2b2   :  { %2674 = vmatpush3.msra.mxu1 %v3210_v53 }
 0x2b3   :  { %2676 = vmatmul.mubr.f32.vlgmr.msra.gmra.mrb[0].mxu1 %v1136_v23  ;;  %2866 = vmatprep.subr.bf16.mxu1 %v2865_v61 }
 0x2b4   :  { %2678 = vmatprep.mubr.f32.mxu1 %v1146_v40  ;;  %2868 = vmatpush3.bf16.msra.mxu1 %v2865_v61 }
 0x2b5   :  { %2870 = vmatprep.subr.bf16.mxu1 %v3269_v12 }
 0x2b7   :  { %2679 = vmatmul.mubr.f32.gmra.mrb[2].mxu1 %v1156_v42 }
 0x2b8   :  { %2872 = vmatpush3.bf16.msra.mxu1 %v3269_v12  ;;  %2691 = vmatprep.mubr.f32.mxu1 %v3279_v48 }
 0x2b9   :  { %2689 = vmatprep.subr.mxu1 %v3219_v5 }
 0x2bc   :  { %2690 = vmatpush3.msra.mxu1 %v3219_v5 }
 0x2bd   :  { %2692 = vmatmul.mubr.f32.vlgmr.msra.gmra.mrb[0].mxu1 %v3277_v59  ;;  %2874 = vmatprep.subr.bf16.mxu1 %v3145_v43 }
 0x2be   :  { %2694 = vmatprep.mubr.f32.mxu1 %v1144_v36  ;;  %2876 = vmatpush3.bf16.msra.mxu1 %v3145_v43  ;;  %v1765_v43 = vsel %vm1050_vm4, %v1746_v44, 0 }
 0x2bf   :  { %2878 = vmatprep.subr.bf16.mxu1 %v3212_v56  ;;  %v3322_v46 = vand.u32 4294901760, %v1765_v43 }
 0x2c1   :  { %2695 = vmatmul.mubr.f32.gmra.mrb[2].mxu1 %v1154_v27  ;;  %v3325_v30 = vsub.f32 %v1765_v43, %v3322_v46  ;;  %2713 = vmatprep.subr.mxu0 %v3322_v46 }
 0x2c2   :  { %2880 = vmatpush3.bf16.msra.mxu1 %v3212_v56  ;;  %2707 = vmatprep.mubr.f32.mxu1 %v3279_v48 }
 0x2c3   :  { %2705 = vmatprep.subr.mxu1 %v3210_v53  ;;  %2714 = vmatpush3.msra.mxu0 %v3322_v46  ;;  %v3330_v47 = vand.u32 4294901760, %v3325_v30 }
 0x2c6   :  { %2706 = vmatpush3.msra.mxu1 %v3210_v53  ;;  %v1877_v53 = vsub.f32 %v3325_v30, %v3330_v47 }
 0x2c7   :  { %2708 = vmatmul.mubr.f32.vlgmr.msra.gmra.mrb[0].mxu1 %v3277_v59 }
 0x2c8   :  { %2710 = vmatprep.mubr.f32.mxu1 %v1144_v36  ;;  %v1878_v56 = vand.u32 4294901760, %v1877_v53  ;;  %v2362_v53 = vld [vmem:[%s3388_s2 + $0x8] ss:$0 sm:$0xff] }
 0x2ca   :  { %2721 = vmatprep.subr.mxu1 %v1878_v56 }
 0x2cb   :  { %2711 = vmatmul.mubr.f32.gmra.mrb[2].mxu1 %v1154_v27 }
 0x2cc   :  { %2722 = vmatpush3.msra.mxu1 %v1878_v56 }
 0x2cd   :  { %2729 = vmatprep.subr.mxu1 %v3325_v30 }
 0x378   :  { %v2629_v5 = vpop.f32.mrb[4].mxu0 }
 0x379   :  { %v1130_v54 = vpop.f32.mrb[5].mxu0  ;;  %v1141_v8 = vadd.f32 %v2629_v5, %v2361_v62 }
 0x37a   :  { %v1131_v9 = vadd.f32 %v2361_v62, %v1130_v54 }
 0x380   :  { %v2632_v58 = vpop.f32.mrb[6].mxu0 }
 0x381   :  { %v1150_v60 = vpop.f32.mrb[7].mxu0  ;;  %v1161_v12 = vadd.f32 %v2632_v58, %v2361_v62 }
 0x382   :  { %v1151_v14 = vadd.f32 %v2361_v62, %v1150_v60  ;;  %v2363_v60 = vld [vmem:[%s3388_s2 + $0x9] ss:$0 sm:$0xff] }
 0x39a   :  { %v2709_v6 = vpop.f32.mrb[0].mxu1 }
 0x39b   :  { %v2886_v7 = vadd.f32 %v2709_v6, %v1141_v8  ;;  %v1659_v10 = vpop.f32.mrb[1].mxu1 }
 0x39c   :  { %v2888_v11 = vadd.f32 %v1659_v10, %v1131_v9 }
 0x39d   :  { %v1683_v13 = vsel %vm1681_vm13, %v2886_v7, 0.0 }
 0x39e   :  { %v1682_v15 = vsel %vm1681_vm13, %v2888_v11, 0.0  ;;  %v2712_v16 = vpop.f32.mrb[2].mxu1 }
 0x39f   :  { %v1684_v20 = vadd.f32 %v1683_v13, %v1682_v15  ;;  %v2890_v21 = vadd.f32 %v2712_v16, %v1161_v12  ;;  %v1671_v1 = vpop.f32.mrb[3].mxu1 }
 0x3a0   :  { %v2892_v22 = vadd.f32 %v1671_v1, %v1151_v14 }
 0x3a1   :  { %v1687_v59 = vsel %vm1681_vm13, %v2890_v21, 0.0 }
 0x3a2   :  { %v1685_v41 = vsel %vm1681_vm13, %v2892_v22, 0.0 }
 0x3a3   :  { %v1686_v45 = vadd.f32 %v1685_v41, %v1684_v20 }
 0x3a5   :  { %v1688_v48 = vadd.f32 %v1687_v59, %v1686_v45 }
 0x3a7   :  { %v1689_v18 = vrot.slane %v1688_v48, 4 }
 0x3a9   :  { %v1690_v17 = vadd.f32 %v1689_v18, %v1688_v48 }
 0x3ab   :  { %v1691_v0 = vrot.slane %v1690_v17, 2 }
 0x3ad   :  { %v1692_v19 = vadd.f32 %v1691_v0, %v1690_v17 }
 0x3af   :  { %v1693_v23 = vrot.slane %v1692_v19, 1 }
 0x3b1   :  { %v1694_v24 = vadd.f32 %v1693_v23, %v1692_v19 }
 0x3b3   :  { %v1695_v25 = vmul.f32 0.03125, %v1694_v24 }
 0x3b5   :  { %v1696_v26 = vsub.f32 %v2888_v11, %v1695_v25  ;;  %v1697_v28 = vsub.f32 %v2886_v7, %v1695_v25  ;;  %v1698_v29 = vsub.f32 %v2892_v22, %v1695_v25  ;;  %v1699_v31 = vsub.f32 %v2890_v21, %v1695_v25 }
 0x3b7   :  { %v1700_v32 = vmul.f32 %v1696_v26, %v1696_v26  ;;  %v1701_v33 = vmul.f32 %v1697_v28, %v1697_v28  ;;  %v1702_v3 = vmul.f32 %v1698_v29, %v1698_v29  ;;  %v1703_v34 = vmul.f32 %v1699_v31, %v1699_v31 }
 0x3b9   :  { %v1704_v35 = vsel %vm1681_vm13, %v1700_v32, 0.0  ;;  %v1705_v2 = vsel %vm1681_vm13, %v1701_v33, 0.0  ;;  %v1707_v36 = vsel %vm1681_vm13, %v1702_v3, 0.0  ;;  %v1709_v38 = vsel %vm1681_vm13, %v1703_v34, 0.0 }
 0x3ba   :  { %v1706_v27 = vadd.f32 %v1705_v2, %v1704_v35 }
 0x3bc   :  { %v1708_v37 = vadd.f32 %v1707_v36, %v1706_v27 }
 0x3be   :  { %v1710_v39 = vadd.f32 %v1709_v38, %v1708_v37 }
 0x3c0   :  { %v1711_v40 = vrot.slane %v1710_v39, 4 }
 0x3c2   :  { %v1712_v42 = vadd.f32 %v1711_v40, %v1710_v39 }
 0x3c4   :  { %v1713_v49 = vrot.slane %v1712_v42, 2 }
 0x3c6   :  { %v1714_v50 = vadd.f32 %v1713_v49, %v1712_v42 }
 0x3c8   :  { %v1715_v51 = vrot.slane %v1714_v50, 1 }
 0x3ca   :  { %v1716_v52 = vadd.f32 %v1715_v51, %v1714_v50 }
 0x3cc   :  { %v1717_v61 = vmul.f32 0.03125, %v1716_v52 }
 0x3ce   :  { %v1718_v44 = vadd.f32 1e-05, %v1717_v61 }
 0x3d0   :  { %2961 = vrsqrt.f32 %v1718_v44 }
 0x3da   :  { %v2962_v43 = vpop.eup %2961 }
 0x3db   :  { %v1721_v56 = vmul.f32 %v2962_v43, %v1697_v28  ;;  %v1722_v5 = vmul.f32 %v2962_v43, %v1698_v29  ;;  %v1720_v54 = vmul.f32 %v2962_v43, %v1696_v26  ;;  %v1723_v58 = vmul.f32 %v2962_v43, %v1699_v31 }
 0x3dd   :  { %v1730_v62 = vmul.f32 %v2362_v53, %v1721_v56  ;;  %v1731_v8 = vmul.f32 %v2362_v53, %v1722_v5  ;;  %v1729_v9 = vmul.f32 %v2362_v53, %v1720_v54  ;;  %v1732_v6 = vmul.f32 %v2362_v53, %v1723_v58 }
 0x3df   :  { %v1740_v7 = vadd.f32 %v2363_v60, %v1731_v8  ;;  %v1738_v10 = vadd.f32 %v2363_v60, %v1729_v9  ;;  %v1739_v11 = vadd.f32 %v2363_v60, %v1730_v62  ;;  %v1741_v12 = vadd.f32 %v2363_v60, %v1732_v6 }
 0x3e1   :  { %v1744_v13 = vmax.f32 %v1740_v7, 0.0  ;;  %v1742_v14 = vmax.f32 %v1738_v10, 0.0  ;;  %v1743_v15 = vmax.f32 %v1739_v11, 0.0  ;;  %v1745_v16 = vmax.f32 %v1741_v12, 0.0 }
 0x3e3   :  { %v1753_v20 = vsel %vm1681_vm13, %v1742_v14, 0  ;;  %v1756_v21 = vsel %vm1681_vm13, %v1743_v15, 0  ;;  %v1759_v1 = vsel %vm1681_vm13, %v1744_v13, 0  ;;  %v1762_v22 = vsel %vm1681_vm13, %v1745_v16, 0 }
 0x3e4   :  { %v1833_v41 = vand.u32 4294901760, %v1753_v20  ;;  %v1843_v45 = vand.u32 4294901760, %v1756_v21  ;;  %v1853_v59 = vand.u32 4294901760, %v1759_v1  ;;  %v1863_v48 = vand.u32 4294901760, %v1762_v22 }
 0x3e6   :  { %2723 = vmatprep.mubr.f32.mxu1 %v1833_v41  ;;  %v1844_v18 = vsub.f32 %v1756_v21, %v1843_v45  ;;  %v1834_v17 = vsub.f32 %v1753_v20, %v1833_v41  ;;  %v1854_v0 = vsub.f32 %v1759_v1, %v1853_v59  ;;  %v1864_v19 = vsub.f32 %v1762_v22, %v1863_v48 }
 0x3e7   :  { %2724 = vmatmul.mubr.f32.vlgmr.msra.gmra.mrb[4].mxu1 %v1843_v45 }
 0x3e8   :  { %2726 = vmatprep.mubr.f32.mxu1 %v1853_v59  ;;  %2730 = vmatpush3.msra.mxu1 %v3325_v30  ;;  %v1835_v23 = vand.u32 4294901760, %v1834_v17  ;;  %v1845_v24 = vand.u32 4294901760, %v1844_v18  ;;  %v1855_v25 = vand.u32 4294901760, %v1854_v0  ;;  %v1865_v26 = vand.u32 4294901760, %v1864_v19 }
 0x3e9   :  { %2737 = vmatprep.subr.mxu1 %v3322_v46 }
 0x3ea   :  { %v1836_v28 = vsub.f32 %v1834_v17, %v1835_v23  ;;  %v1846_v29 = vsub.f32 %v1844_v18, %v1845_v24  ;;  %v1856_v31 = vsub.f32 %v1854_v0, %v1855_v25  ;;  %v1866_v3 = vsub.f32 %v1864_v19, %v1865_v26 }
 0x3eb   :  { %2727 = vmatmul.mubr.f32.gmra.mrb[6].mxu1 %v1863_v48 }
 0x3ec   :  { %2731 = vmatprep.mubr.f32.mxu1 %v1834_v17  ;;  %v1837_v32 = vand.u32 4294901760, %v1836_v28  ;;  %v1847_v33 = vand.u32 4294901760, %v1846_v29  ;;  %v1857_v34 = vand.u32 4294901760, %v1856_v31  ;;  %v1867_v30 = vand.u32 4294901760, %v1866_v3 }
 0x3ee   :  { %2715 = vmatprep.mubr.f32.mxu0 %v1837_v32 }
 0x3ef   :  { %2716 = vmatmul.mubr.f32.vlgmr.msra.gmra.mrb[8].mxu0 %v1847_v33  ;;  %2732 = vmatmul.mubr.f32.vlgmr.msra.gmra.mrb[4].mxu1 %v1844_v18 }
 0x3f0   :  { %2718 = vmatprep.mubr.f32.mxu0 %v1857_v34  ;;  %2734 = vmatprep.mubr.f32.mxu1 %v1854_v0 }
 0x3f1   :  { %2738 = vmatpush3.msra.mxu1 %v3322_v46 }
 0x3f2   :  { %2745 = vmatprep.subr.mxu1 %v3330_v47 }
 0x3f3   :  { %2719 = vmatmul.mubr.f32.gmra.mrb[10].mxu0 %v1867_v30  ;;  %2735 = vmatmul.mubr.f32.gmra.mrb[6].mxu1 %v1864_v19 }
 0x3f4   :  { %2739 = vmatprep.mubr.f32.mxu1 %v1835_v23 }
 0x3f7   :  { %2740 = vmatmul.mubr.f32.vlgmr.msra.gmra.mrb[4].mxu1 %v1845_v24 }
 0x3f8   :  { %2742 = vmatprep.mubr.f32.mxu1 %v1855_v25  ;;  %2746 = vmatpush3.msra.mxu1 %v3330_v47  ;;  %v2364_v47 = vld [vmem:[%s3388_s2 + $0xa] ss:$0 sm:$0xff] }
 0x3f9   :  { %2753 = vmatprep.subr.mxu1 %v3322_v46 }
 0x3fb   :  { %2743 = vmatmul.mubr.f32.gmra.mrb[6].mxu1 %v1865_v26 }
 0x3fc   :  { %2747 = vmatprep.mubr.f32.mxu1 %v1833_v41 }
 0x3ff   :  { %2748 = vmatmul.mubr.f32.vlgmr.msra.gmra.mrb[4].mxu1 %v1843_v45 }
 0x400   :  { %2750 = vmatprep.mubr.f32.mxu1 %v1853_v59  ;;  %2754 = vmatpush3.msra.mxu1 %v3322_v46 }
 0x403   :  { %2751 = vmatmul.mubr.f32.gmra.mrb[6].mxu1 %v1863_v48 }
 0x404   :  { %2755 = vmatprep.mubr.f32.mxu1 %v1833_v41 }
 0x407   :  { %2756 = vmatmul.mubr.f32.vlgmr.msra.gmra.mrb[4].mxu1 %v1843_v45 }
 0x408   :  { %2758 = vmatprep.mubr.f32.mxu1 %v1853_v59 }
 0x40b   :  { %2759 = vmatmul.mubr.f32.gmra.mrb[6].mxu1 %v1863_v48 }
 0x4c2   :  { %v2717_v35 = vpop.f32.mrb[8].mxu0 }
 0x4c3   :  { %v1839_v2 = vpop.f32.mrb[9].mxu0  ;;  %v1850_v37 = vadd.f32 %v2717_v35, %v2364_v47 }
 0x4c4   :  { %v1840_v38 = vadd.f32 %v2364_v47, %v1839_v2 }
 0x4c6   :  { %v2720_v27 = vpop.f32.mrb[10].mxu0 }
 0x4c7   :  { %v1859_v36 = vpop.f32.mrb[11].mxu0  ;;  %v1870_v46 = vadd.f32 %v2720_v27, %v2364_v47 }
 0x4c8   :  { %v1860_v51 = vadd.f32 %v2364_v47, %v1859_v36 }
 0x4da   :  { %v2757_v39 = vpop.f32.mrb[4].mxu1 }
 0x4db   :  { %v2894_v40 = vadd.f32 %v2757_v39, %v1850_v37  ;;  %v2320_v42 = vpop.f32.mrb[5].mxu1 }
 0x4dc   :  { %v2896_v49 = vadd.f32 %v2320_v42, %v1840_v38 }
 0x4dd   :  { %v2343_v50 = vadd.f32 %v2894_v40, %v3164_v55 }
 0x4de   :  { %v2342_v52 = vadd.f32 %v2896_v49, %v3166_v57  ;;  %v2760_v61 = vpop.f32.mrb[6].mxu1 }
 0x4df   :  { %2347 = vst.msk [vmem:[%s3389_s3 + $0x8] sm:$0xff] %vm810_vm3, %v2343_v50  ;;  %v2898_v44 = vadd.f32 %v2760_v61, %v1870_v46  ;;  %v2332_v43 = vpop.f32.mrb[7].mxu1 }
 0x4e0   :  { %2346 = vst.msk [vmem:[%s3389_s3] sm:$0xff] %vm810_vm3, %v2342_v52  ;;  %v2900_v53 = vadd.f32 %v2332_v43, %v1860_v51 }
 0x4e1   :  { %v2345_v56 = vadd.f32 %v2898_v44, %v3172_v63 }
 0x4e2   :  { %v2344_v55 = vadd.f32 %v2900_v53, %v3174_v4 }
 0x4e3   :  { %2349 = vst.msk [vmem:[%s3389_s3 + $0x18] sm:$0xff] %vm810_vm3, %v2345_v56 }
 0x4e4   :  { %2348 = vst.msk [vmem:[%s3389_s3 + $0x10] sm:$0xff] %vm810_vm3, %v2344_v55 }

</bundles_post_ra>
